<compile_context>
chip_gen: v7x
topology: tpu7x:2x2x1
jax: 0.10.0
libtpu: 0.0.40
codegen_flags: <defaults>
</compile_context>

<pallas_src>
import functools

import jax
import jax.numpy as jnp
from jax import lax
from jax.experimental import pallas as pl
from jax.experimental.pallas import tpu as pltpu

INPUT_SIZE = 2
N_NEURON = 10
OUTPUT_SIZE = 2

CHUNK_ROWS = 16                     # sublane rows per in-kernel chunk (2 vregs)
CHUNK_ELEMS = 128 * CHUNK_ROWS      # 2048 batch elements per chunk


def _sigmoid(z):
    # One EUP push (tanh) instead of exp + multi-op divide.
    return 0.5 * jnp.tanh(0.5 * z) + 0.5


def _softplus(t):
    # Numerically stable log(1 + exp(t)); elementwise only, no log1p.
    return jnp.maximum(t, 0.0) + jnp.log(1.0 + jnp.exp(-jnp.abs(t)))


def _mlp_kernel(x_ref, w1_ref, b1_ref, w2_ref, b2_ref, o_ref):
    """One batch tile, class-major / batch-dense layout.

    x_ref : (INPUT_SIZE, R, 128)    VMEM  (batch dense on sublanes + lanes)
    w1_ref: (INPUT_SIZE, N_NEURON)  SMEM  (fc1.weight.T)
    b1_ref: (N_NEURON,)             SMEM
    w2_ref: (N_NEURON, OUTPUT_SIZE) SMEM  (fc2.weight.T)
    b2_ref: (OUTPUT_SIZE,)          SMEM
    o_ref : (OUTPUT_SIZE, R, 128)   VMEM  (log-probabilities)
    """
    rows = x_ref.shape[1]
    n_sub = rows // CHUNK_ROWS      # static Python int

    def chunk_body(c, carry):
        off = pl.multiple_of(c * CHUNK_ROWS, CHUNK_ROWS)

        # Each feature row of this chunk: (CHUNK_ROWS, 128), fully dense vregs.
        xi = [x_ref[i, pl.ds(off, CHUNK_ROWS), :] for i in range(INPUT_SIZE)]

        # fc1 + sigmoid: unrolled scalar*vector MACs on the VPU (no MXU).
        hs = []
        for j in range(N_NEURON):
            acc = xi[0] * w1_ref[0, j]
            for i in range(1, INPUT_SIZE):
                acc = acc + xi[i] * w1_ref[i, j]
            hs.append(_sigmoid(acc + b1_ref[j]))

        # fc2 + sigmoid.
        ys = []
        for k in range(OUTPUT_SIZE):
            acc = hs[0] * w2_ref[0, k]
            for j in range(1, N_NEURON):
                acc = acc + hs[j] * w2_ref[j, k]
            ys.append(_sigmoid(acc + b2_ref[k]))

        # LogSoftmax over the class axis (leading axis) -> purely elementwise,
        # no cross-lane (XLU) reductions.
        if OUTPUT_SIZE == 2:
            d = ys[1] - ys[0]
            o_ref[0, pl.ds(off, CHUNK_ROWS), :] = -_softplus(d)
            o_ref[1, pl.ds(off, CHUNK_ROWS), :] = -_softplus(-d)
        else:
            m = ys[0]
            for k in range(1, OUTPUT_SIZE):
                m = jnp.maximum(m, ys[k])
            s = jnp.exp(ys[0] - m)
            for k in range(1, OUTPUT_SIZE):
                s = s + jnp.exp(ys[k] - m)
            lse = m + jnp.log(s)
            for k in range(OUTPUT_SIZE):
                o_ref[k, pl.ds(off, CHUNK_ROWS), :] = ys[k] - lse

        return carry

    lax.fori_loop(0, n_sub, chunk_body, 0, unroll=True)


def _round_up(n, m):
    return (n + m - 1) // m * m


def _cdiv(a, b):
    return -(-a // b)


@functools.partial(jax.jit, static_argnames=("tb_max",))
def mlp_classifier_forward(x, w1, b1, w2, b2, *, tb_max=32768):
    """x: (B, INPUT_SIZE) f32. Returns (B, OUTPUT_SIZE) log-probabilities."""
    assert tb_max % CHUNK_ELEMS == 0, "tile must be a multiple of 2048 elements"
    B = x.shape[0]

    # Grid choice: padded batch split into n_steps tiles of TB elements each
    # (TB a multiple of CHUNK_ELEMS).  Prefer >= 2 steps when the batch allows
    # it so the "parallel" axis can be split across v7x's two TensorCores.
    padded = _round_up(B, CHUNK_ELEMS)
    n_chunks = padded // CHUNK_ELEMS
    n_steps = min(max(2, _cdiv(padded, tb_max)), n_chunks)
    chunks_per_step = _cdiv(n_chunks, n_steps)
    TB = chunks_per_step * CHUNK_ELEMS
    Bp = n_steps * TB
    R = TB // 128

    # Single-pass layout change: (B, F) -> (F, Bp//128, 128), batch dense on
    # sublanes and lanes (no zeros().at[].set() double pass).
    x_t = jnp.pad(x.astype(jnp.float32).T, ((0, 0), (0, Bp - B)))
    x_t = x_t.reshape(INPUT_SIZE, Bp // 128, 128)

    smem = pl.BlockSpec(memory_space=pltpu.MemorySpace.SMEM)

    out_t = pl.pallas_call(
        _mlp_kernel,
        out_shape=jax.ShapeDtypeStruct((OUTPUT_SIZE, Bp // 128, 128), jnp.float32),
        grid_spec=pltpu.PrefetchScalarGridSpec(
            num_scalar_prefetch=0,
            grid=(n_steps,),
            in_specs=[
                pl.BlockSpec((INPUT_SIZE, R, 128), lambda i: (0, i, 0)),
                smem, smem, smem, smem,
            ],
            out_specs=pl.BlockSpec((OUTPUT_SIZE, R, 128), lambda i: (0, i, 0)),
        ),
        compiler_params=pltpu.CompilerParams(
            dimension_semantics=("parallel",)),
    )(x_t, w1, b1, w2, b2)

    # Drop batch padding and return batch-major to match the PyTorch module.
    # (Consumers that accept class-major output can skip this transpose.)
    return out_t.reshape(OUTPUT_SIZE, Bp)[:, :B].T


def init_params(key):
    """Deterministic init matching nn.Linear U(-1/sqrt(fan_in), 1/sqrt(fan_in))."""
    k1, k2, k3, k4 = jax.random.split(key, 4)
    bound1 = 1.0 / jnp.sqrt(float(INPUT_SIZE))
    bound2 = 1.0 / jnp.sqrt(float(N_NEURON))
    # Stored as [in, out] (kernel layout); equivalent to PyTorch W.T.
    w1 = jax.random.uniform(k1, (INPUT_SIZE, N_NEURON), jnp.float32, -bound1, bound1)
    b1 = jax.random.uniform(k2, (N_NEURON,), jnp.float32, -bound1, bound1)
    w2 = jax.random.uniform(k3, (N_NEURON, OUTPUT_SIZE), jnp.float32, -bound2, bound2)
    b2 = jax.random.uniform(k4, (OUTPUT_SIZE,), jnp.float32, -bound2, bound2)
    return w1, b1, w2, b2


def reference_forward(x, w1, b1, w2, b2):
    """Pure-JAX reference for sanity checking."""
    h = jax.nn.sigmoid(x @ w1 + b1)
    y = jax.nn.sigmoid(h @ w2 + b2)
    return jax.nn.log_softmax(y, axis=1)


if __name__ == "__main__":
    key = jax.random.PRNGKey(0)
    kx1, kx2, kp = jax.random.split(key, 3)
    w1, b1, w2, b2 = init_params(kp)

    # Run 1: small batch, default tile -> single grid step, one in-kernel chunk.
    B1 = 200
    x1 = jax.random.normal(kx1, (B1, INPUT_SIZE), jnp.float32)
    out1 = jax.block_until_ready(mlp_classifier_forward(x1, w1, b1, w2, b2))
    ref1 = reference_forward(x1, w1, b1, w2, b2)
    assert out1.shape == (B1, OUTPUT_SIZE)
    assert jnp.allclose(out1, ref1, atol=5e-5, rtol=1e-5), "mismatch vs reference (run 1)"

    # Run 2: forces a 2-step grid and a multi-chunk in-kernel loop
    # (exercises the pipelined batch grid and the chunked fori_loop path).
    B2 = 5000
    x2 = jax.random.normal(kx2, (B2, INPUT_SIZE), jnp.float32)
    out2 = jax.block_until_ready(
        mlp_classifier_forward(x2, w1, b1, w2, b2, tb_max=8192))
    ref2 = reference_forward(x2, w1, b1, w2, b2)
    assert out2.shape == (B2, OUTPUT_SIZE)
    assert jnp.allclose(out2, ref2, atol=5e-5, rtol=1e-5), "mismatch vs reference (run 2)"

    print("KERNEL_OK")
</pallas_src>

<mosaic_0001>
module attributes {stable_mosaic.version = 11 : i64} {
  func.func @_mlp_kernel(%arg0: i32, %arg1: memref<2x16x128xf32, #tpu.memory_space<vmem>>, %arg2: memref<2x10xf32, #tpu.memory_space<smem>>, %arg3: memref<10xf32, #tpu.memory_space<smem>>, %arg4: memref<10x2xf32, #tpu.memory_space<smem>>, %arg5: memref<2xf32, #tpu.memory_space<smem>>, %arg6: memref<2x16x128xf32, #tpu.memory_space<vmem>>) attributes {dimension_semantics = [#tpu.dimension_semantics<parallel>], iteration_bounds = array<i64: 1>, scalar_prefetch = 0 : i64, scratch_operands = 0 : i64, tpu.core_type = #tpu.core_type<tc>, window_params = [{transform_indices = @transform_0, window_bounds = array<i64: 2, 16, 128>}, {transform_indices = @transform_1, window_bounds = array<i64: 2, 10>}, {transform_indices = @transform_2, window_bounds = array<i64: 10>}, {transform_indices = @transform_3, window_bounds = array<i64: 10, 2>}, {transform_indices = @transform_4, window_bounds = array<i64: 2>}, {transform_indices = @transform_5, window_bounds = array<i64: 2, 16, 128>}]} {
    %c0_i32 = arith.constant 0 : i32
    %c16_i32 = arith.constant 16 : i32
    %0 = arith.muli %c0_i32, %c16_i32 : i32
    %1 = tpu.assume_multiple %0, 16 : i32
    %c0 = arith.constant 0 : index
    %2 = arith.index_cast %1 : i32 to index
    %c0_0 = arith.constant 0 : index
    %3 = vector.load %arg1[%c0, %2, %c0_0] : memref<2x16x128xf32, #tpu.memory_space<vmem>>, vector<1x16x128xf32>
    %4 = vector.shape_cast %3 : vector<1x16x128xf32> to vector<16x128xf32>
    %c1 = arith.constant 1 : index
    %5 = arith.index_cast %1 : i32 to index
    %c0_1 = arith.constant 0 : index
    %6 = vector.load %arg1[%c1, %5, %c0_1] : memref<2x16x128xf32, #tpu.memory_space<vmem>>, vector<1x16x128xf32>
    %7 = vector.shape_cast %6 : vector<1x16x128xf32> to vector<16x128xf32>
    %c0_2 = arith.constant 0 : index
    %c0_3 = arith.constant 0 : index
    %8 = memref.load %arg2[%c0_2, %c0_3] : memref<2x10xf32, #tpu.memory_space<smem>>
    %9 = vector.broadcast %8 : f32 to vector<16x128xf32>
    %10 = arith.mulf %4, %9 : vector<16x128xf32>
    %c1_4 = arith.constant 1 : index
    %c0_5 = arith.constant 0 : index
    %11 = memref.load %arg2[%c1_4, %c0_5] : memref<2x10xf32, #tpu.memory_space<smem>>
    %12 = vector.broadcast %11 : f32 to vector<16x128xf32>
    %13 = arith.mulf %7, %12 : vector<16x128xf32>
    %14 = arith.addf %10, %13 : vector<16x128xf32>
    %c0_6 = arith.constant 0 : index
    %15 = memref.load %arg3[%c0_6] : memref<10xf32, #tpu.memory_space<smem>>
    %16 = vector.broadcast %15 : f32 to vector<16x128xf32>
    %17 = arith.addf %14, %16 : vector<16x128xf32>
    %cst = arith.constant 5.000000e-01 : f32
    %18 = vector.broadcast %cst : f32 to vector<16x128xf32>
    %19 = arith.mulf %18, %17 : vector<16x128xf32>
    %20 = math.tanh %19 : vector<16x128xf32>
    %cst_7 = arith.constant 5.000000e-01 : f32
    %21 = vector.broadcast %cst_7 : f32 to vector<16x128xf32>
    %22 = arith.mulf %21, %20 : vector<16x128xf32>
    %cst_8 = arith.constant 5.000000e-01 : f32
    %23 = vector.broadcast %cst_8 : f32 to vector<16x128xf32>
    %24 = arith.addf %22, %23 : vector<16x128xf32>
    %c0_9 = arith.constant 0 : index
    %c1_10 = arith.constant 1 : index
    %25 = memref.load %arg2[%c0_9, %c1_10] : memref<2x10xf32, #tpu.memory_space<smem>>
    %26 = vector.broadcast %25 : f32 to vector<16x128xf32>
    %27 = arith.mulf %4, %26 : vector<16x128xf32>
    %c1_11 = arith.constant 1 : index
    %c1_12 = arith.constant 1 : index
    %28 = memref.load %arg2[%c1_11, %c1_12] : memref<2x10xf32, #tpu.memory_space<smem>>
    %29 = vector.broadcast %28 : f32 to vector<16x128xf32>
    %30 = arith.mulf %7, %29 : vector<16x128xf32>
    %31 = arith.addf %27, %30 : vector<16x128xf32>
    %c1_13 = arith.constant 1 : index
    %32 = memref.load %arg3[%c1_13] : memref<10xf32, #tpu.memory_space<smem>>
    %33 = vector.broadcast %32 : f32 to vector<16x128xf32>
    %34 = arith.addf %31, %33 : vector<16x128xf32>
    %cst_14 = arith.constant 5.000000e-01 : f32
    %35 = vector.broadcast %cst_14 : f32 to vector<16x128xf32>
    %36 = arith.mulf %35, %34 : vector<16x128xf32>
    %37 = math.tanh %36 : vector<16x128xf32>
    %cst_15 = arith.constant 5.000000e-01 : f32
    %38 = vector.broadcast %cst_15 : f32 to vector<16x128xf32>
    %39 = arith.mulf %38, %37 : vector<16x128xf32>
    %cst_16 = arith.constant 5.000000e-01 : f32
    %40 = vector.broadcast %cst_16 : f32 to vector<16x128xf32>
    %41 = arith.addf %39, %40 : vector<16x128xf32>
    %c0_17 = arith.constant 0 : index
    %c2 = arith.constant 2 : index
    %42 = memref.load %arg2[%c0_17, %c2] : memref<2x10xf32, #tpu.memory_space<smem>>
    %43 = vector.broadcast %42 : f32 to vector<16x128xf32>
    %44 = arith.mulf %4, %43 : vector<16x128xf32>
    %c1_18 = arith.constant 1 : index
    %c2_19 = arith.constant 2 : index
    %45 = memref.load %arg2[%c1_18, %c2_19] : memref<2x10xf32, #tpu.memory_space<smem>>
    %46 = vector.broadcast %45 : f32 to vector<16x128xf32>
    %47 = arith.mulf %7, %46 : vector<16x128xf32>
    %48 = arith.addf %44, %47 : vector<16x128xf32>
    %c2_20 = arith.constant 2 : index
    %49 = memref.load %arg3[%c2_20] : memref<10xf32, #tpu.memory_space<smem>>
    %50 = vector.broadcast %49 : f32 to vector<16x128xf32>
    %51 = arith.addf %48, %50 : vector<16x128xf32>
    %cst_21 = arith.constant 5.000000e-01 : f32
    %52 = vector.broadcast %cst_21 : f32 to vector<16x128xf32>
    %53 = arith.mulf %52, %51 : vector<16x128xf32>
    %54 = math.tanh %53 : vector<16x128xf32>
    %cst_22 = arith.constant 5.000000e-01 : f32
    %55 = vector.broadcast %cst_22 : f32 to vector<16x128xf32>
    %56 = arith.mulf %55, %54 : vector<16x128xf32>
    %cst_23 = arith.constant 5.000000e-01 : f32
    %57 = vector.broadcast %cst_23 : f32 to vector<16x128xf32>
    %58 = arith.addf %56, %57 : vector<16x128xf32>
    %c0_24 = arith.constant 0 : index
    %c3 = arith.constant 3 : index
    %59 = memref.load %arg2[%c0_24, %c3] : memref<2x10xf32, #tpu.memory_space<smem>>
    %60 = vector.broadcast %59 : f32 to vector<16x128xf32>
    %61 = arith.mulf %4, %60 : vector<16x128xf32>
    %c1_25 = arith.constant 1 : index
    %c3_26 = arith.constant 3 : index
    %62 = memref.load %arg2[%c1_25, %c3_26] : memref<2x10xf32, #tpu.memory_space<smem>>
    %63 = vector.broadcast %62 : f32 to vector<16x128xf32>
    %64 = arith.mulf %7, %63 : vector<16x128xf32>
    %65 = arith.addf %61, %64 : vector<16x128xf32>
    %c3_27 = arith.constant 3 : index
    %66 = memref.load %arg3[%c3_27] : memref<10xf32, #tpu.memory_space<smem>>
    %67 = vector.broadcast %66 : f32 to vector<16x128xf32>
    %68 = arith.addf %65, %67 : vector<16x128xf32>
    %cst_28 = arith.constant 5.000000e-01 : f32
    %69 = vector.broadcast %cst_28 : f32 to vector<16x128xf32>
    %70 = arith.mulf %69, %68 : vector<16x128xf32>
    %71 = math.tanh %70 : vector<16x128xf32>
    %cst_29 = arith.constant 5.000000e-01 : f32
    %72 = vector.broadcast %cst_29 : f32 to vector<16x128xf32>
    %73 = arith.mulf %72, %71 : vector<16x128xf32>
    %cst_30 = arith.constant 5.000000e-01 : f32
    %74 = vector.broadcast %cst_30 : f32 to vector<16x128xf32>
    %75 = arith.addf %73, %74 : vector<16x128xf32>
    %c0_31 = arith.constant 0 : index
    %c4 = arith.constant 4 : index
    %76 = memref.load %arg2[%c0_31, %c4] : memref<2x10xf32, #tpu.memory_space<smem>>
    %77 = vector.broadcast %76 : f32 to vector<16x128xf32>
    %78 = arith.mulf %4, %77 : vector<16x128xf32>
    %c1_32 = arith.constant 1 : index
    %c4_33 = arith.constant 4 : index
    %79 = memref.load %arg2[%c1_32, %c4_33] : memref<2x10xf32, #tpu.memory_space<smem>>
    %80 = vector.broadcast %79 : f32 to vector<16x128xf32>
    %81 = arith.mulf %7, %80 : vector<16x128xf32>
    %82 = arith.addf %78, %81 : vector<16x128xf32>
    %c4_34 = arith.constant 4 : index
    %83 = memref.load %arg3[%c4_34] : memref<10xf32, #tpu.memory_space<smem>>
    %84 = vector.broadcast %83 : f32 to vector<16x128xf32>
    %85 = arith.addf %82, %84 : vector<16x128xf32>
    %cst_35 = arith.constant 5.000000e-01 : f32
    %86 = vector.broadcast %cst_35 : f32 to vector<16x128xf32>
    %87 = arith.mulf %86, %85 : vector<16x128xf32>
    %88 = math.tanh %87 : vector<16x128xf32>
    %cst_36 = arith.constant 5.000000e-01 : f32
    %89 = vector.broadcast %cst_36 : f32 to vector<16x128xf32>
    %90 = arith.mulf %89, %88 : vector<16x128xf32>
    %cst_37 = arith.constant 5.000000e-01 : f32
    %91 = vector.broadcast %cst_37 : f32 to vector<16x128xf32>
    %92 = arith.addf %90, %91 : vector<16x128xf32>
    %c0_38 = arith.constant 0 : index
    %c5 = arith.constant 5 : index
    %93 = memref.load %arg2[%c0_38, %c5] : memref<2x10xf32, #tpu.memory_space<smem>>
    %94 = vector.broadcast %93 : f32 to vector<16x128xf32>
    %95 = arith.mulf %4, %94 : vector<16x128xf32>
    %c1_39 = arith.constant 1 : index
    %c5_40 = arith.constant 5 : index
    %96 = memref.load %arg2[%c1_39, %c5_40] : memref<2x10xf32, #tpu.memory_space<smem>>
    %97 = vector.broadcast %96 : f32 to vector<16x128xf32>
    %98 = arith.mulf %7, %97 : vector<16x128xf32>
    %99 = arith.addf %95, %98 : vector<16x128xf32>
    %c5_41 = arith.constant 5 : index
    %100 = memref.load %arg3[%c5_41] : memref<10xf32, #tpu.memory_space<smem>>
    %101 = vector.broadcast %100 : f32 to vector<16x128xf32>
    %102 = arith.addf %99, %101 : vector<16x128xf32>
    %cst_42 = arith.constant 5.000000e-01 : f32
    %103 = vector.broadcast %cst_42 : f32 to vector<16x128xf32>
    %104 = arith.mulf %103, %102 : vector<16x128xf32>
    %105 = math.tanh %104 : vector<16x128xf32>
    %cst_43 = arith.constant 5.000000e-01 : f32
    %106 = vector.broadcast %cst_43 : f32 to vector<16x128xf32>
    %107 = arith.mulf %106, %105 : vector<16x128xf32>
    %cst_44 = arith.constant 5.000000e-01 : f32
    %108 = vector.broadcast %cst_44 : f32 to vector<16x128xf32>
    %109 = arith.addf %107, %108 : vector<16x128xf32>
    %c0_45 = arith.constant 0 : index
    %c6 = arith.constant 6 : index
    %110 = memref.load %arg2[%c0_45, %c6] : memref<2x10xf32, #tpu.memory_space<smem>>
    %111 = vector.broadcast %110 : f32 to vector<16x128xf32>
    %112 = arith.mulf %4, %111 : vector<16x128xf32>
    %c1_46 = arith.constant 1 : index
    %c6_47 = arith.constant 6 : index
    %113 = memref.load %arg2[%c1_46, %c6_47] : memref<2x10xf32, #tpu.memory_space<smem>>
    %114 = vector.broadcast %113 : f32 to vector<16x128xf32>
    %115 = arith.mulf %7, %114 : vector<16x128xf32>
    %116 = arith.addf %112, %115 : vector<16x128xf32>
    %c6_48 = arith.constant 6 : index
    %117 = memref.load %arg3[%c6_48] : memref<10xf32, #tpu.memory_space<smem>>
    %118 = vector.broadcast %117 : f32 to vector<16x128xf32>
    %119 = arith.addf %116, %118 : vector<16x128xf32>
    %cst_49 = arith.constant 5.000000e-01 : f32
    %120 = vector.broadcast %cst_49 : f32 to vector<16x128xf32>
    %121 = arith.mulf %120, %119 : vector<16x128xf32>
    %122 = math.tanh %121 : vector<16x128xf32>
    %cst_50 = arith.constant 5.000000e-01 : f32
    %123 = vector.broadcast %cst_50 : f32 to vector<16x128xf32>
    %124 = arith.mulf %123, %122 : vector<16x128xf32>
    %cst_51 = arith.constant 5.000000e-01 : f32
    %125 = vector.broadcast %cst_51 : f32 to vector<16x128xf32>
    %126 = arith.addf %124, %125 : vector<16x128xf32>
    %c0_52 = arith.constant 0 : index
    %c7 = arith.constant 7 : index
    %127 = memref.load %arg2[%c0_52, %c7] : memref<2x10xf32, #tpu.memory_space<smem>>
    %128 = vector.broadcast %127 : f32 to vector<16x128xf32>
    %129 = arith.mulf %4, %128 : vector<16x128xf32>
    %c1_53 = arith.constant 1 : index
    %c7_54 = arith.constant 7 : index
    %130 = memref.load %arg2[%c1_53, %c7_54] : memref<2x10xf32, #tpu.memory_space<smem>>
    %131 = vector.broadcast %130 : f32 to vector<16x128xf32>
    %132 = arith.mulf %7, %131 : vector<16x128xf32>
    %133 = arith.addf %129, %132 : vector<16x128xf32>
    %c7_55 = arith.constant 7 : index
    %134 = memref.load %arg3[%c7_55] : memref<10xf32, #tpu.memory_space<smem>>
    %135 = vector.broadcast %134 : f32 to vector<16x128xf32>
    %136 = arith.addf %133, %135 : vector<16x128xf32>
    %cst_56 = arith.constant 5.000000e-01 : f32
    %137 = vector.broadcast %cst_56 : f32 to vector<16x128xf32>
    %138 = arith.mulf %137, %136 : vector<16x128xf32>
    %139 = math.tanh %138 : vector<16x128xf32>
    %cst_57 = arith.constant 5.000000e-01 : f32
    %140 = vector.broadcast %cst_57 : f32 to vector<16x128xf32>
    %141 = arith.mulf %140, %139 : vector<16x128xf32>
    %cst_58 = arith.constant 5.000000e-01 : f32
    %142 = vector.broadcast %cst_58 : f32 to vector<16x128xf32>
    %143 = arith.addf %141, %142 : vector<16x128xf32>
    %c0_59 = arith.constant 0 : index
    %c8 = arith.constant 8 : index
    %144 = memref.load %arg2[%c0_59, %c8] : memref<2x10xf32, #tpu.memory_space<smem>>
    %145 = vector.broadcast %144 : f32 to vector<16x128xf32>
    %146 = arith.mulf %4, %145 : vector<16x128xf32>
    %c1_60 = arith.constant 1 : index
    %c8_61 = arith.constant 8 : index
    %147 = memref.load %arg2[%c1_60, %c8_61] : memref<2x10xf32, #tpu.memory_space<smem>>
    %148 = vector.broadcast %147 : f32 to vector<16x128xf32>
    %149 = arith.mulf %7, %148 : vector<16x128xf32>
    %150 = arith.addf %146, %149 : vector<16x128xf32>
    %c8_62 = arith.constant 8 : index
    %151 = memref.load %arg3[%c8_62] : memref<10xf32, #tpu.memory_space<smem>>
    %152 = vector.broadcast %151 : f32 to vector<16x128xf32>
    %153 = arith.addf %150, %152 : vector<16x128xf32>
    %cst_63 = arith.constant 5.000000e-01 : f32
    %154 = vector.broadcast %cst_63 : f32 to vector<16x128xf32>
    %155 = arith.mulf %154, %153 : vector<16x128xf32>
    %156 = math.tanh %155 : vector<16x128xf32>
    %cst_64 = arith.constant 5.000000e-01 : f32
    %157 = vector.broadcast %cst_64 : f32 to vector<16x128xf32>
    %158 = arith.mulf %157, %156 : vector<16x128xf32>
    %cst_65 = arith.constant 5.000000e-01 : f32
    %159 = vector.broadcast %cst_65 : f32 to vector<16x128xf32>
    %160 = arith.addf %158, %159 : vector<16x128xf32>
    %c0_66 = arith.constant 0 : index
    %c9 = arith.constant 9 : index
    %161 = memref.load %arg2[%c0_66, %c9] : memref<2x10xf32, #tpu.memory_space<smem>>
    %162 = vector.broadcast %161 : f32 to vector<16x128xf32>
    %163 = arith.mulf %4, %162 : vector<16x128xf32>
    %c1_67 = arith.constant 1 : index
    %c9_68 = arith.constant 9 : index
    %164 = memref.load %arg2[%c1_67, %c9_68] : memref<2x10xf32, #tpu.memory_space<smem>>
    %165 = vector.broadcast %164 : f32 to vector<16x128xf32>
    %166 = arith.mulf %7, %165 : vector<16x128xf32>
    %167 = arith.addf %163, %166 : vector<16x128xf32>
    %c9_69 = arith.constant 9 : index
    %168 = memref.load %arg3[%c9_69] : memref<10xf32, #tpu.memory_space<smem>>
    %169 = vector.broadcast %168 : f32 to vector<16x128xf32>
    %170 = arith.addf %167, %169 : vector<16x128xf32>
    %cst_70 = arith.constant 5.000000e-01 : f32
    %171 = vector.broadcast %cst_70 : f32 to vector<16x128xf32>
    %172 = arith.mulf %171, %170 : vector<16x128xf32>
    %173 = math.tanh %172 : vector<16x128xf32>
    %cst_71 = arith.constant 5.000000e-01 : f32
    %174 = vector.broadcast %cst_71 : f32 to vector<16x128xf32>
    %175 = arith.mulf %174, %173 : vector<16x128xf32>
    %cst_72 = arith.constant 5.000000e-01 : f32
    %176 = vector.broadcast %cst_72 : f32 to vector<16x128xf32>
    %177 = arith.addf %175, %176 : vector<16x128xf32>
    %c0_73 = arith.constant 0 : index
    %c0_74 = arith.constant 0 : index
    %178 = memref.load %arg4[%c0_73, %c0_74] : memref<10x2xf32, #tpu.memory_space<smem>>
    %179 = vector.broadcast %178 : f32 to vector<16x128xf32>
    %180 = arith.mulf %24, %179 : vector<16x128xf32>
    %c1_75 = arith.constant 1 : index
    %c0_76 = arith.constant 0 : index
    %181 = memref.load %arg4[%c1_75, %c0_76] : memref<10x2xf32, #tpu.memory_space<smem>>
    %182 = vector.broadcast %181 : f32 to vector<16x128xf32>
    %183 = arith.mulf %41, %182 : vector<16x128xf32>
    %184 = arith.addf %180, %183 : vector<16x128xf32>
    %c2_77 = arith.constant 2 : index
    %c0_78 = arith.constant 0 : index
    %185 = memref.load %arg4[%c2_77, %c0_78] : memref<10x2xf32, #tpu.memory_space<smem>>
    %186 = vector.broadcast %185 : f32 to vector<16x128xf32>
    %187 = arith.mulf %58, %186 : vector<16x128xf32>
    %188 = arith.addf %184, %187 : vector<16x128xf32>
    %c3_79 = arith.constant 3 : index
    %c0_80 = arith.constant 0 : index
    %189 = memref.load %arg4[%c3_79, %c0_80] : memref<10x2xf32, #tpu.memory_space<smem>>
    %190 = vector.broadcast %189 : f32 to vector<16x128xf32>
    %191 = arith.mulf %75, %190 : vector<16x128xf32>
    %192 = arith.addf %188, %191 : vector<16x128xf32>
    %c4_81 = arith.constant 4 : index
    %c0_82 = arith.constant 0 : index
    %193 = memref.load %arg4[%c4_81, %c0_82] : memref<10x2xf32, #tpu.memory_space<smem>>
    %194 = vector.broadcast %193 : f32 to vector<16x128xf32>
    %195 = arith.mulf %92, %194 : vector<16x128xf32>
    %196 = arith.addf %192, %195 : vector<16x128xf32>
    %c5_83 = arith.constant 5 : index
    %c0_84 = arith.constant 0 : index
    %197 = memref.load %arg4[%c5_83, %c0_84] : memref<10x2xf32, #tpu.memory_space<smem>>
    %198 = vector.broadcast %197 : f32 to vector<16x128xf32>
    %199 = arith.mulf %109, %198 : vector<16x128xf32>
    %200 = arith.addf %196, %199 : vector<16x128xf32>
    %c6_85 = arith.constant 6 : index
    %c0_86 = arith.constant 0 : index
    %201 = memref.load %arg4[%c6_85, %c0_86] : memref<10x2xf32, #tpu.memory_space<smem>>
    %202 = vector.broadcast %201 : f32 to vector<16x128xf32>
    %203 = arith.mulf %126, %202 : vector<16x128xf32>
    %204 = arith.addf %200, %203 : vector<16x128xf32>
    %c7_87 = arith.constant 7 : index
    %c0_88 = arith.constant 0 : index
    %205 = memref.load %arg4[%c7_87, %c0_88] : memref<10x2xf32, #tpu.memory_space<smem>>
    %206 = vector.broadcast %205 : f32 to vector<16x128xf32>
    %207 = arith.mulf %143, %206 : vector<16x128xf32>
    %208 = arith.addf %204, %207 : vector<16x128xf32>
    %c8_89 = arith.constant 8 : index
    %c0_90 = arith.constant 0 : index
    %209 = memref.load %arg4[%c8_89, %c0_90] : memref<10x2xf32, #tpu.memory_space<smem>>
    %210 = vector.broadcast %209 : f32 to vector<16x128xf32>
    %211 = arith.mulf %160, %210 : vector<16x128xf32>
    %212 = arith.addf %208, %211 : vector<16x128xf32>
    %c9_91 = arith.constant 9 : index
    %c0_92 = arith.constant 0 : index
    %213 = memref.load %arg4[%c9_91, %c0_92] : memref<10x2xf32, #tpu.memory_space<smem>>
    %214 = vector.broadcast %213 : f32 to vector<16x128xf32>
    %215 = arith.mulf %177, %214 : vector<16x128xf32>
    %216 = arith.addf %212, %215 : vector<16x128xf32>
    %c0_93 = arith.constant 0 : index
    %217 = memref.load %arg5[%c0_93] : memref<2xf32, #tpu.memory_space<smem>>
    %218 = vector.broadcast %217 : f32 to vector<16x128xf32>
    %219 = arith.addf %216, %218 : vector<16x128xf32>
    %cst_94 = arith.constant 5.000000e-01 : f32
    %220 = vector.broadcast %cst_94 : f32 to vector<16x128xf32>
    %221 = arith.mulf %220, %219 : vector<16x128xf32>
    %222 = math.tanh %221 : vector<16x128xf32>
    %cst_95 = arith.constant 5.000000e-01 : f32
    %223 = vector.broadcast %cst_95 : f32 to vector<16x128xf32>
    %224 = arith.mulf %223, %222 : vector<16x128xf32>
    %cst_96 = arith.constant 5.000000e-01 : f32
    %225 = vector.broadcast %cst_96 : f32 to vector<16x128xf32>
    %226 = arith.addf %224, %225 : vector<16x128xf32>
    %c0_97 = arith.constant 0 : index
    %c1_98 = arith.constant 1 : index
    %227 = memref.load %arg4[%c0_97, %c1_98] : memref<10x2xf32, #tpu.memory_space<smem>>
    %228 = vector.broadcast %227 : f32 to vector<16x128xf32>
    %229 = arith.mulf %24, %228 : vector<16x128xf32>
    %c1_99 = arith.constant 1 : index
    %c1_100 = arith.constant 1 : index
    %230 = memref.load %arg4[%c1_99, %c1_100] : memref<10x2xf32, #tpu.memory_space<smem>>
    %231 = vector.broadcast %230 : f32 to vector<16x128xf32>
    %232 = arith.mulf %41, %231 : vector<16x128xf32>
    %233 = arith.addf %229, %232 : vector<16x128xf32>
    %c2_101 = arith.constant 2 : index
    %c1_102 = arith.constant 1 : index
    %234 = memref.load %arg4[%c2_101, %c1_102] : memref<10x2xf32, #tpu.memory_space<smem>>
    %235 = vector.broadcast %234 : f32 to vector<16x128xf32>
    %236 = arith.mulf %58, %235 : vector<16x128xf32>
    %237 = arith.addf %233, %236 : vector<16x128xf32>
    %c3_103 = arith.constant 3 : index
    %c1_104 = arith.constant 1 : index
    %238 = memref.load %arg4[%c3_103, %c1_104] : memref<10x2xf32, #tpu.memory_space<smem>>
    %239 = vector.broadcast %238 : f32 to vector<16x128xf32>
    %240 = arith.mulf %75, %239 : vector<16x128xf32>
    %241 = arith.addf %237, %240 : vector<16x128xf32>
    %c4_105 = arith.constant 4 : index
    %c1_106 = arith.constant 1 : index
    %242 = memref.load %arg4[%c4_105, %c1_106] : memref<10x2xf32, #tpu.memory_space<smem>>
    %243 = vector.broadcast %242 : f32 to vector<16x128xf32>
    %244 = arith.mulf %92, %243 : vector<16x128xf32>
    %245 = arith.addf %241, %244 : vector<16x128xf32>
    %c5_107 = arith.constant 5 : index
    %c1_108 = arith.constant 1 : index
    %246 = memref.load %arg4[%c5_107, %c1_108] : memref<10x2xf32, #tpu.memory_space<smem>>
    %247 = vector.broadcast %246 : f32 to vector<16x128xf32>
    %248 = arith.mulf %109, %247 : vector<16x128xf32>
    %249 = arith.addf %245, %248 : vector<16x128xf32>
    %c6_109 = arith.constant 6 : index
    %c1_110 = arith.constant 1 : index
    %250 = memref.load %arg4[%c6_109, %c1_110] : memref<10x2xf32, #tpu.memory_space<smem>>
    %251 = vector.broadcast %250 : f32 to vector<16x128xf32>
    %252 = arith.mulf %126, %251 : vector<16x128xf32>
    %253 = arith.addf %249, %252 : vector<16x128xf32>
    %c7_111 = arith.constant 7 : index
    %c1_112 = arith.constant 1 : index
    %254 = memref.load %arg4[%c7_111, %c1_112] : memref<10x2xf32, #tpu.memory_space<smem>>
    %255 = vector.broadcast %254 : f32 to vector<16x128xf32>
    %256 = arith.mulf %143, %255 : vector<16x128xf32>
    %257 = arith.addf %253, %256 : vector<16x128xf32>
    %c8_113 = arith.constant 8 : index
    %c1_114 = arith.constant 1 : index
    %258 = memref.load %arg4[%c8_113, %c1_114] : memref<10x2xf32, #tpu.memory_space<smem>>
    %259 = vector.broadcast %258 : f32 to vector<16x128xf32>
    %260 = arith.mulf %160, %259 : vector<16x128xf32>
    %261 = arith.addf %257, %260 : vector<16x128xf32>
    %c9_115 = arith.constant 9 : index
    %c1_116 = arith.constant 1 : index
    %262 = memref.load %arg4[%c9_115, %c1_116] : memref<10x2xf32, #tpu.memory_space<smem>>
    %263 = vector.broadcast %262 : f32 to vector<16x128xf32>
    %264 = arith.mulf %177, %263 : vector<16x128xf32>
    %265 = arith.addf %261, %264 : vector<16x128xf32>
    %c1_117 = arith.constant 1 : index
    %266 = memref.load %arg5[%c1_117] : memref<2xf32, #tpu.memory_space<smem>>
    %267 = vector.broadcast %266 : f32 to vector<16x128xf32>
    %268 = arith.addf %265, %267 : vector<16x128xf32>
    %cst_118 = arith.constant 5.000000e-01 : f32
    %269 = vector.broadcast %cst_118 : f32 to vector<16x128xf32>
    %270 = arith.mulf %269, %268 : vector<16x128xf32>
    %271 = math.tanh %270 : vector<16x128xf32>
    %cst_119 = arith.constant 5.000000e-01 : f32
    %272 = vector.broadcast %cst_119 : f32 to vector<16x128xf32>
    %273 = arith.mulf %272, %271 : vector<16x128xf32>
    %cst_120 = arith.constant 5.000000e-01 : f32
    %274 = vector.broadcast %cst_120 : f32 to vector<16x128xf32>
    %275 = arith.addf %273, %274 : vector<16x128xf32>
    %276 = arith.subf %275, %226 : vector<16x128xf32>
    %cst_121 = arith.constant 0.000000e+00 : f32
    %277 = vector.broadcast %cst_121 : f32 to vector<16x128xf32>
    %278 = arith.maximumf %276, %277 : vector<16x128xf32>
    %279 = math.absf %276 : vector<16x128xf32>
    %cst_122 = arith.constant 0.000000e+00 : f32
    %280 = vector.broadcast %cst_122 : f32 to vector<16x128xf32>
    %281 = arith.subf %280, %279 : vector<16x128xf32>
    %282 = math.exp %281 : vector<16x128xf32>
    %cst_123 = arith.constant 1.000000e+00 : f32
    %283 = vector.broadcast %cst_123 : f32 to vector<16x128xf32>
    %284 = arith.addf %283, %282 : vector<16x128xf32>
    %285 = math.log %284 : vector<16x128xf32>
    %286 = arith.addf %278, %285 : vector<16x128xf32>
    %cst_124 = arith.constant 0.000000e+00 : f32
    %287 = vector.broadcast %cst_124 : f32 to vector<16x128xf32>
    %288 = arith.subf %287, %286 : vector<16x128xf32>
    %c0_125 = arith.constant 0 : index
    %289 = arith.index_cast %1 : i32 to index
    %c0_126 = arith.constant 0 : index
    %290 = vector.load %arg6[%c0_125, %289, %c0_126] : memref<2x16x128xf32, #tpu.memory_space<vmem>>, vector<1x16x128xf32>
    %291 = vector.shape_cast %290 : vector<1x16x128xf32> to vector<16x128xf32>
    %292 = vector.shape_cast %288 : vector<16x128xf32> to vector<1x16x128xf32>
    tpu.vector_store %arg6[%c0_125, %289, %c0_126], %292 {strides = array<i32>} : memref<2x16x128xf32, #tpu.memory_space<vmem>>, vector<1x16x128xf32>,
    %cst_127 = arith.constant 0.000000e+00 : f32
    %293 = vector.broadcast %cst_127 : f32 to vector<16x128xf32>
    %294 = arith.subf %293, %276 : vector<16x128xf32>
    %cst_128 = arith.constant 0.000000e+00 : f32
    %295 = vector.broadcast %cst_128 : f32 to vector<16x128xf32>
    %296 = arith.maximumf %294, %295 : vector<16x128xf32>
    %297 = math.absf %294 : vector<16x128xf32>
    %cst_129 = arith.constant 0.000000e+00 : f32
    %298 = vector.broadcast %cst_129 : f32 to vector<16x128xf32>
    %299 = arith.subf %298, %297 : vector<16x128xf32>
    %300 = math.exp %299 : vector<16x128xf32>
    %cst_130 = arith.constant 1.000000e+00 : f32
    %301 = vector.broadcast %cst_130 : f32 to vector<16x128xf32>
    %302 = arith.addf %301, %300 : vector<16x128xf32>
    %303 = math.log %302 : vector<16x128xf32>
    %304 = arith.addf %296, %303 : vector<16x128xf32>
    %cst_131 = arith.constant 0.000000e+00 : f32
    %305 = vector.broadcast %cst_131 : f32 to vector<16x128xf32>
    %306 = arith.subf %305, %304 : vector<16x128xf32>
    %c1_132 = arith.constant 1 : index
    %307 = arith.index_cast %1 : i32 to index
    %c0_133 = arith.constant 0 : index
    %308 = vector.load %arg6[%c1_132, %307, %c0_133] : memref<2x16x128xf32, #tpu.memory_space<vmem>>, vector<1x16x128xf32>
    %309 = vector.shape_cast %308 : vector<1x16x128xf32> to vector<16x128xf32>
    %310 = vector.shape_cast %306 : vector<16x128xf32> to vector<1x16x128xf32>
    tpu.vector_store %arg6[%c1_132, %307, %c0_133], %310 {strides = array<i32>} : memref<2x16x128xf32, #tpu.memory_space<vmem>>, vector<1x16x128xf32>,
    %c1_i32 = arith.constant 1 : i32
    return
  }
  func.func @transform_0(%arg0: i32) -> (i32, i32, i32) {
    %c0_i32 = arith.constant 0 : i32
    %c0_i32_0 = arith.constant 0 : i32
    %c0_i32_1 = arith.constant 0 : i32
    return %c0_i32, %arg0, %c0_i32_0 : i32, i32, i32
  }
  func.func @transform_1(%arg0: i32) -> (i32, i32) {
    %c0_i32 = arith.constant 0 : i32
    %c0_i32_0 = arith.constant 0 : i32
    %c0_i32_1 = arith.constant 0 : i32
    return %c0_i32, %c0_i32_0 : i32, i32
  }
  func.func @transform_2(%arg0: i32) -> i32 {
    %c0_i32 = arith.constant 0 : i32
    %c0_i32_0 = arith.constant 0 : i32
    return %c0_i32 : i32
  }
  func.func @transform_3(%arg0: i32) -> (i32, i32) {
    %c0_i32 = arith.constant 0 : i32
    %c0_i32_0 = arith.constant 0 : i32
    %c0_i32_1 = arith.constant 0 : i32
    return %c0_i32, %c0_i32_0 : i32, i32
  }
  func.func @transform_4(%arg0: i32) -> i32 {
    %c0_i32 = arith.constant 0 : i32
    %c0_i32_0 = arith.constant 0 : i32
    return %c0_i32 : i32
  }
  func.func @transform_5(%arg0: i32) -> (i32, i32, i32) {
    %c0_i32 = arith.constant 0 : i32
    %c0_i32_0 = arith.constant 0 : i32
    %c0_i32_1 = arith.constant 0 : i32
    return %c0_i32, %arg0, %c0_i32_0 : i32, i32, i32
  }
}

</mosaic_0001>

<bundles_post_ra>
// kernel: mlp_classifier_forward.1
= control target key start
LH: loop header
LB: loop body
LE: loop exit
PB: predicated region body
PF: predicated region fallthrough
CT: control target
= control target key end

     0   :  { %10 = vsyncpa [#allocation3], 0  ;;  %s1003_s0 = inlined_call_operand.vmem [shape: f32[2,16,128], index: 0, kind: input, shape index: {}]   ;;  %s1004_s1 = inlined_call_operand.vmem [shape: f32[2,10], index: 1, kind: input, shape index: {}]   ;;  %s1005_s2 = inlined_call_operand.vmem [shape: f32[10], index: 2, kind: input, shape index: {}]   ;;  %s1006_s3 = inlined_call_operand.vmem [shape: f32[10,2], index: 3, kind: input, shape index: {}]   ;;  %s1007_s4 = inlined_call_operand.vmem [shape: f32[2], index: 4, kind: input, shape index: {}]   ;;  %s1008_s5 = inlined_call_operand.vmem [shape: f32[2,16,128], index: 5, kind: output, shape index: {}]  }
   0x1   :  { %11 = vsyncpa [#allocation5], 0  ;;  %s31_s20 = sshll.u32 %s1005_s2, 4  ;;  %s32_s20 = int_to_ptr.vmem [resolvable:$true] %s31_s20 }
   0x2   :  { %12 = vsyncpa [#allocation8], 0  ;;  %s21_s23 = sshll.u32 %s1004_s1, 4  ;;  %s616_s24 = scalar_lea.vmem %s32_s20, 16  ;;  %s22_s23 = int_to_ptr.vmem [resolvable:$true] %s21_s23 }
   0x3   :  { %p617_p0 = scmp.ne.s32.totalorder %s32_s20, %s616_s24  ;;  %p621_p1 = scmp.lt.s32.totalorder %s32_s20, %s32_s20 }
   0x4   :  { %p622_p2 = scmp.lt.s32.totalorder %s616_s24, %s616_s24 }
   0x6   :  { %p623_p3 = por %p622_p2, %p621_p1 }
   0x8   :  { %p624_p4 = pnand %p623_p3, %p617_p0 }
   0xa   :  { %627 = shalt.err (!%p624_p4)
}
   0xb   :  { %s670_s25 = smov [#allocation4]   ;;  %s628_s26 = scalar_lea.vmem %s22_s23, 32 }
   0xc   :  { %34 = dma.vmem_to_smem %s32_s20, 16, %s670_s25, [#allocation5]  }
   0xd   :  { %p629_p5 = scmp.ne.s32.totalorder %s22_s23, %s628_s26  ;;  %p633_p6 = scmp.lt.s32.totalorder %s22_s23, %s22_s23 }
   0xe   :  { %p634_p7 = scmp.lt.s32.totalorder %s628_s26, %s628_s26 }
  0x10   :  { %p635_p8 = por %p634_p7, %p633_p6 }
  0x12   :  { %p636_p9 = pnand %p635_p8, %p629_p5 }
  0x14   :  { %639 = shalt.err (!%p636_p9)
}
  0x15   :  { %s671_s2 = smov [#allocation2]   ;;  %s40_s28 = sshll.u32 %s1006_s3, 4  ;;  %s41_s28 = int_to_ptr.vmem [resolvable:$true] %s40_s28 }
  0x16   :  { %24 = dma.vmem_to_smem %s22_s23, 32, %s671_s2, [#allocation3]  }
  0x17   :  { %s53_s6 = sshll.u32 %s1007_s4, 4  ;;  %s640_s7 = scalar_lea.vmem %s41_s28, 256  ;;  %s54_s6 = int_to_ptr.vmem [resolvable:$true] %s53_s6 }
  0x18   :  { %p641_p10 = scmp.ne.s32.totalorder %s41_s28, %s640_s7  ;;  %p645_p11 = scmp.lt.s32.totalorder %s41_s28, %s41_s28 }
  0x19   :  { %p646_p12 = scmp.lt.s32.totalorder %s640_s7, %s640_s7 }
  0x1b   :  { %p647_p13 = por %p646_p12, %p645_p11 }
  0x1d   :  { %p648_p0 = pnand %p647_p13, %p641_p10 }
  0x1f   :  { %651 = shalt.err (!%p648_p0)
}
  0x20   :  { %s672_s8 = smov [#allocation6]   ;;  %s673_s9 = smov 128  }
  0x21   :  { %s674_s10 = smov 8   ;;  %s652_s11 = scalar_lea.vmem %s54_s6, 16 }
  0x22   :  { %46 = dma.vmem_to_smem %s41_s28, 256, %s672_s8, [#allocation5], %s673_s9, %s673_s9, %s674_s10  }
  0x23   :  { %p653_p1 = scmp.ne.s32.totalorder %s54_s6, %s652_s11  ;;  %p657_p2 = scmp.lt.s32.totalorder %s54_s6, %s54_s6 }
  0x24   :  { %p658_p3 = scmp.lt.s32.totalorder %s652_s11, %s652_s11 }
  0x26   :  { %p659_p4 = por %p658_p3, %p657_p2 }
  0x28   :  { %p660_p5 = pnand %p659_p4, %p653_p1 }
  0x2a   :  { %663 = shalt.err (!%p660_p5)
}
  0x2b   :  { %s675_s3 = smov [#allocation7]  }
  0x2c   :  { %56 = dma.vmem_to_smem %s54_s6, 16, %s675_s3, [#allocation8]  }
  0x2d   :  { %664 = dma.done.wait [#allocation3], 32  }
  0x2e   :  { %665 = vsyncadd [#allocation3], 4294967264 }
  0x2f   :  { %666 = dma.done.wait [#allocation5], 272  }
  0x30   :  { %667 = vsyncadd [#allocation5], 4294967024 }
  0x31   :  { %668 = dma.done.wait [#allocation8], 16  }
  0x32   :  { %669 = vsyncadd [#allocation8], 4294967280 }
  0x33   :  { %69 = sfence }
  0x34   :  { %s76_s4 = sld [smem:[#allocation2]]  ;;  %s497_s14 = sld [smem:[#allocation2 + $0x1]]  ;;  %v727_v0 = vld [vmem:[%s1003_s0] sm:$0xff]  ;;  %v732_v1 = vld [vmem:[%s1003_s0 + $0x8] sm:$0xff]  ;;  %v741_v2 = vld [vmem:[%s1003_s0 + $0x10] sm:$0xff] }
  0x35   :  { %s496_s12 = sld [smem:[#allocation2 + $0x80]]  ;;  %s498_s15 = sld [smem:[#allocation2 + $0x81]]  ;;  %v746_v3 = vld [vmem:[%s1003_s0 + $0x18] sm:$0xff] }
  0x36   :  { %s718_s13 = sld [smem:[#allocation4]]  ;;  %s720_s16 = sld [smem:[#allocation4 + $0x1]] }
  0x37   :  { %s722_s17 = sld [smem:[#allocation2 + $0x2]]  ;;  %s748_s1 = sld [smem:[#allocation2 + $0x3]] }
  0x38   :  { %s734_s22 = sld [smem:[#allocation2 + $0x82]]  ;;  %s750_s27 = sld [smem:[#allocation2 + $0x83]] }
  0x39   :  { %s736_s23 = sld [smem:[#allocation4 + $0x2]]  ;;  %s763_s0 = sld [smem:[#allocation4 + $0x3]] }
  0x3a   :  { %v77_v4 = vstv %s76_s4  ;;  %v99_v11 = vstv %s497_s14  ;;  %s765_s28 = sld [smem:[#allocation2 + $0x4]]  ;;  %s779_s6 = sld [smem:[#allocation2 + $0x5]] }
  0x3b   :  { %v78_v5 = vmul.f32 %v77_v4, %v727_v0  ;;  %v79_v6 = vmul.f32 %v77_v4, %v732_v1  ;;  %v81_v7 = vstv %s496_s12  ;;  %v103_v12 = vstv %s498_s15  ;;  %s771_s29 = sld [smem:[#allocation2 + $0x84]]  ;;  %s784_s7 = sld [smem:[#allocation2 + $0x85]] }
  0x3c   :  { %v87_v8 = vstv %s718_s13  ;;  %v82_v9 = vmul.f32 %v741_v2, %v81_v7  ;;  %v83_v10 = vmul.f32 %v746_v3, %v81_v7  ;;  %v100_v13 = vmul.f32 %v99_v11, %v727_v0  ;;  %s777_s30 = sld [smem:[#allocation4 + $0x4]]  ;;  %s786_s8 = sld [smem:[#allocation4 + $0x5]] }
  0x3d   :  { %v101_v14 = vmul.f32 %v99_v11, %v732_v1  ;;  %v104_v15 = vmul.f32 %v741_v2, %v103_v12  ;;  %v105_v16 = vmul.f32 %v746_v3, %v103_v12  ;;  %v109_v19 = vstv %s720_s16  ;;  %s789_s9 = sld [smem:[#allocation2 + $0x6]]  ;;  %s808_s3 = sld [smem:[#allocation2 + $0x7]] }
  0x3e   :  { %v84_v17 = vadd.f32 %v82_v9, %v78_v5  ;;  %v85_v18 = vadd.f32 %v83_v10, %v79_v6  ;;  %v121_v20 = vstv %s722_s17  ;;  %v125_v27 = vstv %s734_s22  ;;  %s793_s10 = sld [smem:[#allocation2 + $0x86]]  ;;  %s815_s4 = sld [smem:[#allocation2 + $0x87]] }
  0x3f   :  { %v106_v21 = vadd.f32 %v104_v15, %v100_v13  ;;  %v107_v22 = vadd.f32 %v105_v16, %v101_v14  ;;  %v122_v23 = vmul.f32 %v121_v20, %v727_v0  ;;  %v123_v24 = vmul.f32 %v121_v20, %v732_v1  ;;  %s795_s11 = sld [smem:[#allocation4 + $0x6]]  ;;  %s819_s12 = sld [smem:[#allocation4 + $0x7]] }
  0x40   :  { %v88_v25 = vadd.f32 %v87_v8, %v84_v17  ;;  %v89_v26 = vadd.f32 %v87_v8, %v85_v18  ;;  %v131_v28 = vstv %s736_s23  ;;  %v126_v31 = vmul.f32 %v741_v2, %v125_v27  ;;  %s821_s13 = sld [smem:[#allocation2 + $0x8]]  ;;  %s838_s16 = sld [smem:[#allocation2 + $0x9]] }
  0x41   :  { %v110_v29 = vadd.f32 %v109_v19, %v106_v21  ;;  %v111_v30 = vadd.f32 %v109_v19, %v107_v22  ;;  %v127_v32 = vmul.f32 %v746_v3, %v125_v27  ;;  %v143_v35 = vstv %s748_s1  ;;  %s831_s14 = sld [smem:[#allocation2 + $0x88]]  ;;  %s849_s17 = sld [smem:[#allocation2 + $0x89]] }
  0x42   :  { %v90_v33 = vmul.f32 0.5, %v88_v25  ;;  %v91_v34 = vmul.f32 0.5, %v89_v26  ;;  %v147_v36 = vstv %s750_s27  ;;  %v128_v39 = vadd.f32 %v126_v31, %v122_v23  ;;  %s833_s15 = sld [smem:[#allocation4 + $0x8]]  ;;  %s861_s18 = sld [smem:[#allocation4 + $0x9]] }
  0x43   :  { %v112_v37 = vmul.f32 0.5, %v110_v29  ;;  %v113_v38 = vmul.f32 0.5, %v111_v30  ;;  %v129_v40 = vadd.f32 %v127_v32, %v123_v24  ;;  %v144_v41 = vmul.f32 %v143_v35, %v727_v0  ;;  %s864_s19 = sld [smem:[#allocation6]]  ;;  %s917_s27 = sld [smem:[#allocation6 + $0x1]] }
  0x44   :  { %552 = vtanh.f32 %v90_v33  ;;  %v145_v42 = vmul.f32 %v143_v35, %v732_v1  ;;  %v148_v43 = vmul.f32 %v741_v2, %v147_v36  ;;  %v132_v44 = vadd.f32 %v131_v28, %v128_v39  ;;  %s866_s20 = sld [smem:[#allocation6 + $0x80]] }
  0x45   :  { %554 = vtanh.f32 %v91_v34  ;;  %v133_v45 = vadd.f32 %v131_v28, %v129_v40  ;;  %v149_v46 = vmul.f32 %v746_v3, %v147_v36  ;;  %v153_v48 = vstv %s763_s0  ;;  %s876_s21 = sld [smem:[#allocation6 + $0x100]]  ;;  %s919_s0 = sld [smem:[#allocation6 + $0x81]] }
  0x46   :  { %556 = vtanh.f32 %v112_v37  ;;  %v150_v47 = vadd.f32 %v148_v43, %v144_v41  ;;  %v165_v49 = vstv %s765_s28  ;;  %v134_v50 = vmul.f32 0.5, %v132_v44  ;;  %s878_s22 = sld [smem:[#allocation6 + $0x180]]  ;;  %s932_s28 = sld [smem:[#allocation6 + $0x101]] }
  0x47   :  { %558 = vtanh.f32 %v113_v38  ;;  %v135_v51 = vmul.f32 0.5, %v133_v45  ;;  %v151_v52 = vadd.f32 %v149_v46, %v145_v42  ;;  %v166_v54 = vmul.f32 %v165_v49, %v727_v0  ;;  %s885_s23 = sld [smem:[#allocation6 + $0x200]] }
  0x48   :  { %v154_v53 = vadd.f32 %v153_v48, %v150_v47  ;;  %v167_v55 = vmul.f32 %v165_v49, %v732_v1  ;;  %v169_v56 = vstv %s771_s29  ;;  %560 = vtanh.f32 %v134_v50  ;;  %s890_s24 = sld [smem:[#allocation6 + $0x280]]  ;;  %s934_s29 = sld [smem:[#allocation6 + $0x181]] }
  0x49   :  { %v155_v57 = vadd.f32 %v153_v48, %v151_v52  ;;  %v170_v58 = vmul.f32 %v741_v2, %v169_v56  ;;  %v171_v59 = vmul.f32 %v746_v3, %v169_v56  ;;  %562 = vtanh.f32 %v135_v51  ;;  %s894_s25 = sld [smem:[#allocation6 + $0x300]] }
  0x4a   :  { %v156_v60 = vmul.f32 0.5, %v154_v53  ;;  %v175_v61 = vstv %s777_s30  ;;  %v187_v62 = vstv %s779_s6  ;;  %v191_v8 = vstv %s784_s7  ;;  %s896_s26 = sld [smem:[#allocation6 + $0x380]]  ;;  %s943_s30 = sld [smem:[#allocation6 + $0x201]] }
  0x4b   :  { %v157_v63 = vmul.f32 0.5, %v155_v57  ;;  %v172_v4 = vadd.f32 %v170_v58, %v166_v54  ;;  %v173_v5 = vadd.f32 %v171_v59, %v167_v55  ;;  %v188_v6 = vmul.f32 %v187_v62, %v727_v0  ;;  %s906_s2 = sld [smem:[#allocation6 + $0x400]]  ;;  %s945_s6 = sld [smem:[#allocation6 + $0x281]] }
  0x4c   :  { %564 = vtanh.f32 %v156_v60  ;;  %v189_v7 = vmul.f32 %v187_v62, %v732_v1  ;;  %v197_v9 = vstv %s786_s8  ;;  %v192_v12 = vmul.f32 %v741_v2, %v191_v8  ;;  %s912_s1 = sld [smem:[#allocation6 + $0x480]]  ;;  %s959_s8 = sld [smem:[#allocation6 + $0x301]] }
  0x4d   :  { %566 = vtanh.f32 %v157_v63  ;;  %v176_v10 = vadd.f32 %v175_v61, %v172_v4  ;;  %v177_v11 = vadd.f32 %v175_v61, %v173_v5  ;;  %v193_v14 = vmul.f32 %v746_v3, %v191_v8  ;;  %s953_s7 = sld [smem:[#allocation7]] }
  0x4e   :  { %v553_v13 = vpop.eup %552  ;;  %v209_v15 = vstv %s789_s9  ;;  %v213_v16 = vstv %s793_s10  ;;  %v219_v17 = vstv %s795_s11  ;;  %v194_v22 = vadd.f32 %v192_v12, %v188_v6  ;;  %s962_s9 = sld [smem:[#allocation6 + $0x381]] }
  0x4f   :  { %v555_v18 = vpop.eup %554  ;;  %v94_v19 = vmul.f32 0.5, %v553_v13  ;;  %v178_v20 = vmul.f32 0.5, %v176_v10  ;;  %v179_v21 = vmul.f32 0.5, %v177_v11  ;;  %v195_v25 = vadd.f32 %v193_v14, %v189_v7  ;;  %s966_s10 = sld [smem:[#allocation6 + $0x401]] }
  0x50   :  { %v557_v23 = vpop.eup %556  ;;  %v95_v24 = vmul.f32 0.5, %v555_v18  ;;  %v210_v26 = vmul.f32 %v209_v15, %v727_v0  ;;  %v211_v27 = vmul.f32 %v209_v15, %v732_v1  ;;  %v198_v31 = vadd.f32 %v197_v9, %v194_v22  ;;  %s974_s11 = sld [smem:[#allocation6 + $0x481]] }
  0x51   :  { %v559_v28 = vpop.eup %558  ;;  %v823_v29 = vadd.f32 0.5, %v94_v19  ;;  %v116_v30 = vmul.f32 0.5, %v557_v23  ;;  %568 = vtanh.f32 %v178_v20  ;;  %v199_v34 = vadd.f32 %v197_v9, %v195_v25 }
  0x52   :  { %v825_v32 = vadd.f32 0.5, %v95_v24  ;;  %v117_v33 = vmul.f32 0.5, %v559_v28  ;;  %570 = vtanh.f32 %v179_v21  ;;  %v561_v35 = vpop.eup %560  ;;  %v200_v37 = vmul.f32 0.5, %v198_v31 }
  0x53   :  { %v827_v36 = vadd.f32 0.5, %v116_v30  ;;  %v214_v38 = vmul.f32 %v741_v2, %v213_v16  ;;  %v215_v39 = vmul.f32 %v746_v3, %v213_v16  ;;  %v563_v40 = vpop.eup %562  ;;  %v138_v42 = vmul.f32 0.5, %v561_v35 }
  0x54   :  { %v835_v41 = vadd.f32 0.5, %v117_v33  ;;  %v201_v43 = vmul.f32 0.5, %v199_v34  ;;  %v231_v44 = vstv %s808_s3  ;;  %v139_v45 = vmul.f32 0.5, %v563_v40  ;;  %s543_s3 = sld [smem:[#allocation7 + $0x1]] }
  0x55   :  { %572 = vtanh.f32 %v200_v37  ;;  %v216_v46 = vadd.f32 %v214_v38, %v210_v26  ;;  %v217_v47 = vadd.f32 %v215_v39, %v211_v27  ;;  %v840_v49 = vadd.f32 0.5, %v138_v42 }
  0x56   :  { %v565_v48 = vpop.eup %564  ;;  %574 = vtanh.f32 %v201_v43  ;;  %v232_v50 = vmul.f32 %v231_v44, %v727_v0  ;;  %v233_v51 = vmul.f32 %v231_v44, %v732_v1  ;;  %v844_v53 = vadd.f32 0.5, %v139_v45 }
  0x57   :  { %v567_v52 = vpop.eup %566  ;;  %v160_v54 = vmul.f32 0.5, %v565_v48  ;;  %v220_v55 = vadd.f32 %v219_v17, %v216_v46  ;;  %v221_v56 = vadd.f32 %v219_v17, %v217_v47  ;;  %v235_v58 = vstv %s815_s4 }
  0x58   :  { %v161_v57 = vmul.f32 0.5, %v567_v52  ;;  %v241_v59 = vstv %s819_s12  ;;  %v253_v60 = vstv %s821_s13  ;;  %v236_v4 = vmul.f32 %v741_v2, %v235_v58 }
  0x59   :  { %v851_v61 = vadd.f32 0.5, %v160_v54  ;;  %v222_v62 = vmul.f32 0.5, %v220_v55  ;;  %v223_v63 = vmul.f32 0.5, %v221_v56  ;;  %v237_v6 = vmul.f32 %v746_v3, %v235_v58 }
  0x5a   :  { %v854_v5 = vadd.f32 0.5, %v161_v57  ;;  %v254_v7 = vmul.f32 %v253_v60, %v727_v0  ;;  %v255_v8 = vmul.f32 %v253_v60, %v732_v1  ;;  %v238_v10 = vadd.f32 %v236_v4, %v232_v50 }
  0x5b   :  { %v569_v9 = vpop.eup %568  ;;  %576 = vtanh.f32 %v222_v62  ;;  %v257_v11 = vstv %s831_s14  ;;  %v263_v12 = vstv %s833_s15  ;;  %v239_v15 = vadd.f32 %v237_v6, %v233_v51 }
  0x5c   :  { %v571_v13 = vpop.eup %570  ;;  %v182_v14 = vmul.f32 0.5, %v569_v9  ;;  %578 = vtanh.f32 %v223_v63  ;;  %v258_v16 = vmul.f32 %v741_v2, %v257_v11  ;;  %v242_v18 = vadd.f32 %v241_v59, %v238_v10 }
  0x5d   :  { %v183_v17 = vmul.f32 0.5, %v571_v13  ;;  %v259_v19 = vmul.f32 %v746_v3, %v257_v11  ;;  %v275_v20 = vstv %s838_s16  ;;  %v243_v22 = vadd.f32 %v241_v59, %v239_v15 }
  0x5e   :  { %v870_v21 = vadd.f32 0.5, %v182_v14  ;;  %v260_v23 = vadd.f32 %v258_v16, %v254_v7  ;;  %v276_v24 = vmul.f32 %v275_v20, %v727_v0  ;;  %v244_v27 = vmul.f32 0.5, %v242_v18 }
  0x5f   :  { %v573_v25 = vpop.eup %572  ;;  %v873_v26 = vadd.f32 0.5, %v183_v17  ;;  %v261_v28 = vadd.f32 %v259_v19, %v255_v8  ;;  %v277_v30 = vmul.f32 %v275_v20, %v732_v1  ;;  %v245_v34 = vmul.f32 0.5, %v243_v22 }
  0x60   :  { %v575_v31 = vpop.eup %574  ;;  %v204_v33 = vmul.f32 0.5, %v573_v25  ;;  %v264_v35 = vadd.f32 %v263_v12, %v260_v23  ;;  %v279_v37 = vstv %s849_s17  ;;  %580 = vtanh.f32 %v244_v27 }
  0x61   :  { %v205_v38 = vmul.f32 0.5, %v575_v31  ;;  %v265_v0 = vadd.f32 %v263_v12, %v261_v28  ;;  %v280_v39 = vmul.f32 %v741_v2, %v279_v37  ;;  %582 = vtanh.f32 %v245_v34 }
  0x62   :  { %v882_v40 = vadd.f32 0.5, %v204_v33  ;;  %v266_v1 = vmul.f32 0.5, %v264_v35  ;;  %v281_v42 = vmul.f32 %v746_v3, %v279_v37  ;;  %v285_v46 = vstv %s861_s18 }
  0x63   :  { %v887_v43 = vadd.f32 0.5, %v205_v38  ;;  %v267_v44 = vmul.f32 0.5, %v265_v0  ;;  %v282_v45 = vadd.f32 %v280_v39, %v276_v24  ;;  %v297_v48 = vstv %s864_s19 }
  0x64   :  { %584 = vtanh.f32 %v266_v1  ;;  %v283_v47 = vadd.f32 %v281_v42, %v277_v30  ;;  %v301_v2 = vstv %s866_s20  ;;  %v298_v51 = vmul.f32 %v297_v48, %v823_v29 }
  0x65   :  { %v577_v3 = vpop.eup %576  ;;  %586 = vtanh.f32 %v267_v44  ;;  %v286_v50 = vadd.f32 %v285_v46, %v282_v45  ;;  %v299_v52 = vmul.f32 %v297_v48, %v825_v32  ;;  %v302_v57 = vmul.f32 %v301_v2, %v827_v36 }
  0x66   :  { %v579_v54 = vpop.eup %578  ;;  %v226_v55 = vmul.f32 0.5, %v577_v3  ;;  %v287_v56 = vadd.f32 %v285_v46, %v283_v47  ;;  %v303_v58 = vmul.f32 %v301_v2, %v835_v41  ;;  %v307_v62 = vstv %s876_s21 }
  0x67   :  { %v227_v59 = vmul.f32 0.5, %v579_v54  ;;  %v288_v60 = vmul.f32 0.5, %v286_v50  ;;  %v313_v63 = vstv %s878_s22  ;;  %v304_v7 = vadd.f32 %v302_v57, %v298_v51 }
  0x68   :  { %v904_v4 = vadd.f32 0.5, %v226_v55  ;;  %v289_v6 = vmul.f32 0.5, %v287_v56  ;;  %v305_v8 = vadd.f32 %v303_v58, %v299_v52  ;;  %v308_v10 = vmul.f32 %v307_v62, %v840_v49 }
  0x69   :  { %v908_v9 = vadd.f32 0.5, %v227_v59  ;;  %588 = vtanh.f32 %v288_v60  ;;  %v309_v11 = vmul.f32 %v307_v62, %v844_v53  ;;  %v314_v12 = vmul.f32 %v313_v63, %v851_v61 }
  0x6a   :  { %590 = vtanh.f32 %v289_v6  ;;  %v315_v13 = vmul.f32 %v313_v63, %v854_v5  ;;  %v319_v14 = vstv %s885_s23  ;;  %v581_v15 = vpop.eup %580  ;;  %v310_v16 = vadd.f32 %v308_v10, %v304_v7 }
  0x6b   :  { %v311_v17 = vadd.f32 %v309_v11, %v305_v8  ;;  %v320_v18 = vmul.f32 %v319_v14, %v870_v21  ;;  %v321_v19 = vmul.f32 %v319_v14, %v873_v26  ;;  %v583_v20 = vpop.eup %582  ;;  %v248_v22 = vmul.f32 0.5, %v581_v15 }
  0x6c   :  { %v325_v23 = vstv %s890_s24  ;;  %v331_v24 = vstv %s894_s25  ;;  %v337_v25 = vstv %s896_s26  ;;  %v249_v27 = vmul.f32 0.5, %v583_v20 }
  0x6d   :  { %v316_v28 = vadd.f32 %v314_v12, %v310_v16  ;;  %v317_v30 = vadd.f32 %v315_v13, %v311_v17  ;;  %v326_v31 = vmul.f32 %v325_v23, %v882_v40  ;;  %v927_v34 = vadd.f32 0.5, %v248_v22 }
  0x6e   :  { %v585_v33 = vpop.eup %584  ;;  %v327_v35 = vmul.f32 %v325_v23, %v887_v43  ;;  %v332_v37 = vmul.f32 %v331_v24, %v904_v4  ;;  %v333_v38 = vmul.f32 %v331_v24, %v908_v9  ;;  %v936_v39 = vadd.f32 0.5, %v249_v27 }
  0x6f   :  { %v587_v0 = vpop.eup %586  ;;  %v270_v1 = vmul.f32 0.5, %v585_v33  ;;  %v322_v42 = vadd.f32 %v320_v18, %v316_v28  ;;  %v323_v44 = vadd.f32 %v321_v19, %v317_v30  ;;  %v338_v46 = vmul.f32 %v337_v25, %v927_v34 }
  0x70   :  { %v271_v45 = vmul.f32 0.5, %v587_v0  ;;  %v343_v47 = vstv %s906_s2  ;;  %v339_v50 = vmul.f32 %v337_v25, %v936_v39  ;;  %v349_v52 = vstv %s912_s1 }
  0x71   :  { %v940_v48 = vadd.f32 0.5, %v270_v1  ;;  %v328_v2 = vadd.f32 %v326_v31, %v322_v42  ;;  %v329_v3 = vadd.f32 %v327_v35, %v323_v44  ;;  %v367_v54 = vstv %s917_s27 }
  0x72   :  { %v947_v51 = vadd.f32 0.5, %v271_v45  ;;  %v371_v55 = vstv %s919_s0  ;;  %v368_v60 = vmul.f32 %v367_v54, %v823_v29  ;;  %v369_v7 = vmul.f32 %v367_v54, %v825_v32 }
  0x73   :  { %v589_v56 = vpop.eup %588  ;;  %v334_v57 = vadd.f32 %v332_v37, %v328_v2  ;;  %v335_v58 = vadd.f32 %v333_v38, %v329_v3  ;;  %v344_v59 = vmul.f32 %v343_v47, %v940_v48  ;;  %v372_v8 = vmul.f32 %v371_v55, %v827_v36 }
  0x74   :  { %v591_v62 = vpop.eup %590  ;;  %v292_v63 = vmul.f32 0.5, %v589_v56  ;;  %v345_v6 = vmul.f32 %v343_v47, %v947_v51  ;;  %v373_v13 = vmul.f32 %v371_v55, %v835_v41  ;;  %v377_v15 = vstv %s932_s28 }
  0x75   :  { %v293_v10 = vmul.f32 0.5, %v591_v62  ;;  %v340_v11 = vadd.f32 %v338_v46, %v334_v57  ;;  %v341_v12 = vadd.f32 %v339_v50, %v335_v58  ;;  %v374_v29 = vadd.f32 %v372_v8, %v368_v60 }
  0x76   :  { %v294_v14 = vadd.f32 0.5, %v292_v63  ;;  %v383_v16 = vstv %s934_s29  ;;  %v375_v36 = vadd.f32 %v373_v13, %v369_v7  ;;  %v378_v20 = vmul.f32 %v377_v15, %v840_v49 }
  0x77   :  { %v295_v17 = vadd.f32 0.5, %v293_v10  ;;  %v346_v18 = vadd.f32 %v344_v59, %v340_v11  ;;  %v347_v32 = vadd.f32 %v345_v6, %v341_v12  ;;  %v379_v41 = vmul.f32 %v377_v15, %v844_v53 }
  0x78   :  { %v350_v19 = vmul.f32 %v349_v52, %v294_v14  ;;  %v384_v22 = vmul.f32 %v383_v16, %v851_v61  ;;  %v385_v24 = vmul.f32 %v383_v16, %v854_v5  ;;  %v389_v25 = vstv %s943_s30 }
  0x79   :  { %v351_v23 = vmul.f32 %v349_v52, %v295_v17  ;;  %v395_v27 = vstv %s945_s6  ;;  %v380_v28 = vadd.f32 %v378_v20, %v374_v29  ;;  %v381_v30 = vadd.f32 %v379_v41, %v375_v36 }
  0x7a   :  { %v390_v31 = vmul.f32 %v389_v25, %v870_v21  ;;  %v352_v33 = vadd.f32 %v350_v19, %v346_v18  ;;  %v355_v49 = vstv %s953_s7  ;;  %v391_v53 = vmul.f32 %v389_v25, %v873_v26 }
  0x7b   :  { %v396_v61 = vmul.f32 %v395_v27, %v882_v40  ;;  %v386_v35 = vadd.f32 %v384_v22, %v380_v28  ;;  %v387_v37 = vadd.f32 %v385_v24, %v381_v30  ;;  %v397_v5 = vmul.f32 %v395_v27, %v887_v43 }
  0x7c   :  { %v401_v38 = vstv %s959_s8  ;;  %v353_v0 = vadd.f32 %v351_v23, %v347_v32  ;;  %v407_v1 = vstv %s962_s9  ;;  %v356_v46 = vadd.f32 %v355_v49, %v352_v33 }
  0x7d   :  { %v392_v42 = vadd.f32 %v390_v31, %v386_v35  ;;  %v393_v44 = vadd.f32 %v391_v53, %v387_v37  ;;  %v402_v45 = vmul.f32 %v401_v38, %v904_v4  ;;  %v403_v21 = vmul.f32 %v401_v38, %v908_v9 }
  0x7e   :  { %v413_v47 = vstv %s966_s10  ;;  %v408_v40 = vmul.f32 %v407_v1, %v927_v34  ;;  %v409_v3 = vmul.f32 %v407_v1, %v936_v39  ;;  %v357_v43 = vadd.f32 %v355_v49, %v353_v0 }
  0x7f   :  { %v398_v26 = vadd.f32 %v396_v61, %v392_v42  ;;  %v399_v2 = vadd.f32 %v397_v5, %v393_v44  ;;  %v419_v50 = vstv %s974_s11  ;;  %v414_v55 = vmul.f32 %v413_v47, %v940_v48 }
  0x80   :  { %v415_v56 = vmul.f32 %v413_v47, %v947_v51  ;;  %v358_v4 = vmul.f32 0.5, %v356_v46  ;;  %v420_v58 = vmul.f32 %v419_v50, %v294_v14  ;;  %v421_v59 = vmul.f32 %v419_v50, %v295_v17 }
  0x81   :  { %v404_v52 = vadd.f32 %v402_v45, %v398_v26  ;;  %v405_v54 = vadd.f32 %v403_v21, %v399_v2  ;;  %v359_v60 = vmul.f32 0.5, %v357_v43  ;;  %v425_v6 = vstv %s543_s3 }
  0x82   :  { %592 = vtanh.f32 %v358_v4 }
  0x83   :  { %v410_v57 = vadd.f32 %v408_v40, %v404_v52  ;;  %v411_v9 = vadd.f32 %v409_v3, %v405_v54  ;;  %594 = vtanh.f32 %v359_v60 }
  0x85   :  { %v416_v62 = vadd.f32 %v414_v55, %v410_v57  ;;  %v417_v63 = vadd.f32 %v415_v56, %v411_v9 }
  0x87   :  { %v422_v34 = vadd.f32 %v420_v58, %v416_v62  ;;  %v423_v39 = vadd.f32 %v421_v59, %v417_v63 }
  0x89   :  { %v426_v7 = vadd.f32 %v425_v6, %v422_v34  ;;  %v427_v8 = vadd.f32 %v425_v6, %v423_v39 }
  0x8b   :  { %v428_v10 = vmul.f32 0.5, %v426_v7  ;;  %v429_v11 = vmul.f32 0.5, %v427_v8 }
  0x8c   :  { %v593_v48 = vpop.eup %592 }
  0x8d   :  { %596 = vtanh.f32 %v428_v10  ;;  %v595_v51 = vpop.eup %594  ;;  %v362_v12 = vmul.f32 0.5, %v593_v48 }
  0x8e   :  { %598 = vtanh.f32 %v429_v11  ;;  %v363_v13 = vmul.f32 0.5, %v595_v51 }
  0x8f   :  { %v364_v15 = vadd.f32 0.5, %v362_v12 }
  0x90   :  { %v365_v17 = vadd.f32 0.5, %v363_v13 }
  0x97   :  { %v597_v14 = vpop.eup %596 }
  0x98   :  { %v599_v29 = vpop.eup %598  ;;  %v432_v16 = vmul.f32 0.5, %v597_v14 }
  0x99   :  { %v433_v18 = vmul.f32 0.5, %v599_v29 }
  0x9a   :  { %v434_v32 = vadd.f32 0.5, %v432_v16 }
  0x9b   :  { %v435_v36 = vadd.f32 0.5, %v433_v18 }
  0x9c   :  { %v436_v19 = vsub.f32 %v434_v32, %v364_v15 }
  0x9d   :  { %v437_v20 = vsub.f32 %v435_v36, %v365_v17 }
  0x9e   :  { %v440_v41 = vand.u32 2147483647, %v436_v19  ;;  %v460_v22 = vsub.f32 0.0, %v436_v19  ;;  %v438_v21 = vmax.f32 %v436_v19, 0.0 }
  0x9f   :  { %v441_v23 = vand.u32 2147483647, %v437_v20  ;;  %v461_v24 = vsub.f32 0.0, %v437_v20  ;;  %v439_v47 = vmax.f32 %v437_v20, 0.0 }
  0xa0   :  { %v442_v25 = vsub.f32 0.0, %v440_v41  ;;  %v464_v27 = vand.u32 2147483647, %v460_v22  ;;  %v462_v40 = vmax.f32 %v460_v22, 0.0 }
  0xa1   :  { %v443_v28 = vsub.f32 0.0, %v441_v23  ;;  %v465_v30 = vand.u32 2147483647, %v461_v24  ;;  %v463_v50 = vmax.f32 %v461_v24, 0.0 }
  0xa2   :  { %v444_v31 = vmul.f32 1.442695, %v442_v25  ;;  %v466_v33 = vsub.f32 0.0, %v464_v27 }
  0xa3   :  { %v446_v49 = vmul.f32 1.442695, %v443_v28  ;;  %v467_v53 = vsub.f32 0.0, %v465_v30 }
  0xa4   :  { %600 = vpow2.f32 %v444_v31  ;;  %v468_v61 = vmul.f32 1.442695, %v466_v33 }
  0xa5   :  { %602 = vpow2.f32 %v446_v49  ;;  %v470_v35 = vmul.f32 1.442695, %v467_v53 }
  0xa6   :  { %604 = vpow2.f32 %v468_v61 }
  0xa7   :  { %606 = vpow2.f32 %v470_v35 }
  0xae   :  { %v601_v37 = vpop.eup %600 }
  0xaf   :  { %v603_v5 = vpop.eup %602  ;;  %v448_v38 = vadd.f32 1.0, %v601_v37 }
  0xb0   :  { %v605_v0 = vpop.eup %604  ;;  %v449_v1 = vadd.f32 1.0, %v603_v5 }
  0xb1   :  { %v607_v42 = vpop.eup %606  ;;  %608 = vlog2.f32 %v448_v38  ;;  %v472_v44 = vadd.f32 1.0, %v605_v0 }
  0xb2   :  { %610 = vlog2.f32 %v449_v1  ;;  %v473_v45 = vadd.f32 1.0, %v607_v42 }
  0xb3   :  { %612 = vlog2.f32 %v472_v44 }
  0xb4   :  { %614 = vlog2.f32 %v473_v45 }
  0xbb   :  { %v609_v46 = vpop.eup %608 }
  0xbc   :  { %v611_v26 = vpop.eup %610  ;;  %v451_v2 = vmul.f32 0.6931472, %v609_v46 }
  0xbd   :  { %v613_v3 = vpop.eup %612  ;;  %v453_v43 = vmul.f32 0.6931472, %v611_v26 }
  0xbe   :  { %v615_v52 = vpop.eup %614  ;;  %v454_v54 = vadd.f32 %v451_v2, %v438_v21  ;;  %v475_v55 = vmul.f32 0.6931472, %v613_v3 }
  0xbf   :  { %v455_v56 = vadd.f32 %v453_v43, %v439_v47  ;;  %v477_v4 = vmul.f32 0.6931472, %v615_v52 }
  0xc0   :  { %v456_v57 = vsub.f32 0.0, %v454_v54  ;;  %v478_v9 = vadd.f32 %v475_v55, %v462_v40 }
  0xc1   :  { %v457_v58 = vsub.f32 0.0, %v455_v56  ;;  %v479_v59 = vadd.f32 %v477_v4, %v463_v50 }
  0xc2   :  { %458 = vst [vmem:[%s1008_s5] sm:$0xff] %v456_v57  ;;  %v480_v60 = vsub.f32 0.0, %v478_v9 }
  0xc3   :  { %459 = vst [vmem:[%s1008_s5 + $0x8] sm:$0xff] %v457_v58  ;;  %v481_v62 = vsub.f32 0.0, %v479_v59 }
  0xc4   :  { %544 = vst [vmem:[%s1008_s5 + $0x10] sm:$0xff] %v480_v60 }
  0xc5   :  { %545 = vst [vmem:[%s1008_s5 + $0x18] sm:$0xff] %v481_v62 }
  0xc6   :  { %489 = vsyncpa [#allocation3], 1 }
  0xc7   :  { %490 = vsyncpa [#allocation5], 1 }
  0xc8   :  { %491 = vsyncpa [#allocation8], 1 }

</bundles_post_ra>
